<compile_context>
chip_gen: v6e
topology: v6e:2x2x1
jax: 0.10.0
libtpu: 0.0.40
codegen_flags: <defaults>
</compile_context>

<pallas_src>
import jax
import jax.numpy as jnp
from jax import lax
from jax.experimental import pallas as pl
from jax.experimental.pallas import tpu as pltpu

HIDDEN = 300
OUT = 100
BN_EPS = 1e-5
LANE = 128


def _round_up(x, m):
    return (x + m - 1) // m * m


def _siamese_kernel(x_ref, w1_ref, b1_ref, gamma_ref, beta_ref,
                    w2_ref, b2_ref, o_ref):
    # x_ref:  (1, N, Dp)   one branch's flattened batch (branch = grid axis 0)
    # w1_ref: (Dp, Hp), b1/gamma/beta: (1, Hp)
    # w2_ref: (Hp, Op),  b2: (1, Op)
    # o_ref:  (1, N, Op)
    x = x_ref[0]                                           # (N, Dp)
    n = jnp.float32(x.shape[0])

    # fc1
    h = jnp.dot(x, w1_ref[...], preferred_element_type=jnp.float32) + b1_ref[...]

    # BatchNorm1d, training mode: per-feature batch mean / biased variance,
    # computed per branch.  Single fused pass: sum and sum-of-squares.
    s = jnp.sum(h, axis=0, keepdims=True)
    ss = jnp.sum(h * h, axis=0, keepdims=True)
    mean = s / n
    var = jnp.maximum(ss / n - mean * mean, 0.0)
    inv = lax.rsqrt(var + BN_EPS)                          # EUP rsqrt
    h_bn = (h - mean) * (inv * gamma_ref[...]) + beta_ref[...]

    # ReLU  (the original code's `F.relu()(output)` is a typo; intent is relu)
    a = jnp.maximum(h_bn, 0.0)

    # fc2
    o_ref[0] = (jnp.dot(a, w2_ref[...], preferred_element_type=jnp.float32)
                + b2_ref[...]).astype(o_ref.dtype)


@jax.jit
def _forward_pair(x_pair, w1, b1, gamma, beta, w2, b2):
    """x_pair: (2, N, D) flattened pair of batches -> ((N, OUT), (N, OUT))."""
    _, n, d = x_pair.shape
    dp = _round_up(d, LANE)
    hp = _round_up(HIDDEN, LANE)      # 384
    op = _round_up(OUT, LANE)         # 128

    # Zero-pad to lane-dense shapes (numerically exact, see header comment).
    x_pair = jnp.pad(x_pair, ((0, 0), (0, 0), (0, dp - d)))
    w1p = jnp.pad(w1, ((0, dp - d), (0, hp - HIDDEN)))
    b1p = jnp.pad(b1, ((0, 0), (0, hp - HIDDEN)))
    gammap = jnp.pad(gamma, ((0, 0), (0, hp - HIDDEN)))
    betap = jnp.pad(beta, ((0, 0), (0, hp - HIDDEN)))
    w2p = jnp.pad(w2, ((0, hp - HIDDEN), (0, op - OUT)))
    b2p = jnp.pad(b2, ((0, 0), (0, op - OUT)))

    const = lambda shape: pl.BlockSpec(shape, lambda b: (0,) * len(shape))

    out = pl.pallas_call(
        _siamese_kernel,
        out_shape=jax.ShapeDtypeStruct((2, n, op), jnp.float32),
        grid_spec=pltpu.PrefetchScalarGridSpec(
            num_scalar_prefetch=0,
            grid=(2,),                                   # branch axis
            in_specs=[
                pl.BlockSpec((1, n, dp), lambda b: (b, 0, 0)),   # x (per branch)
                const((dp, hp)),                                 # w1 (resident)
                const((1, hp)),                                  # b1
                const((1, hp)),                                  # gamma
                const((1, hp)),                                  # beta
                const((hp, op)),                                 # w2
                const((1, op)),                                  # b2
            ],
            out_specs=pl.BlockSpec((1, n, op), lambda b: (b, 0, 0)),
        ),
        compiler_params=pltpu.CompilerParams(
            dimension_semantics=("parallel",)),          # 2 branches -> 2 TCs on v7x
    )(x_pair, w1p, b1p, gammap, betap, w2p, b2p)

    return out[0, :, :OUT], out[1, :, :OUT]


def nn_forward(x1, x2, params):
    """forward(x1, x2) -> (out1, out2); x1, x2 are NCHW with identical shapes."""
    w1, b1, gamma, beta, w2, b2 = params
    n = x1.shape[0]
    assert x2.shape == x1.shape, "Siamese branches are fused; batches must match"
    x_pair = jnp.stack([x1.reshape(n, -1), x2.reshape(n, -1)], axis=0)
    return _forward_pair(x_pair, w1, b1, gamma, beta, w2, b2)
    # TODO(synk): for training-scale N on v7x (64 MiB VMEM), tile the batch axis
    # with a two-pass BN (partial sum/sumsq accumulation) instead of one block.


def init_params(key, in_feature):
    """Deterministic init mirroring torch defaults (Linear: U(-1/sqrt(fan_in), +))."""
    k1, k2, k3, k4 = jax.random.split(key, 4)
    bound1 = 1.0 / jnp.sqrt(jnp.float32(in_feature))
    w1 = jax.random.uniform(k1, (in_feature, HIDDEN), jnp.float32, -bound1, bound1)
    b1 = jax.random.uniform(k2, (1, HIDDEN), jnp.float32, -bound1, bound1)
    gamma = jnp.ones((1, HIDDEN), jnp.float32)   # BatchNorm1d weight
    beta = jnp.zeros((1, HIDDEN), jnp.float32)   # BatchNorm1d bias
    bound2 = 1.0 / jnp.sqrt(jnp.float32(HIDDEN))
    w2 = jax.random.uniform(k3, (HIDDEN, OUT), jnp.float32, -bound2, bound2)
    b2 = jax.random.uniform(k4, (1, OUT), jnp.float32, -bound2, bound2)
    return (w1, b1, gamma, beta, w2, b2)


def _reference_forward_once(x_flat, w1, b1, gamma, beta, w2, b2):
    h = x_flat @ w1 + b1
    mean = jnp.mean(h, axis=0, keepdims=True)
    var = jnp.mean((h - mean) ** 2, axis=0, keepdims=True)
    h_bn = (h - mean) * lax.rsqrt(var + BN_EPS) * gamma + beta
    return jnp.maximum(h_bn, 0.0) @ w2 + b2


if __name__ == "__main__":
    key = jax.random.PRNGKey(0)
    kx1, kx2, kp = jax.random.split(key, 3)

    # Small synthetic "image pair" inputs: NCHW = (8, 1, 16, 16) -> in_feature = 256.
    N, C, H, W = 8, 1, 16, 16
    in_feature = C * H * W
    x1 = jax.random.normal(kx1, (N, C, H, W), jnp.float32)
    x2 = jax.random.normal(kx2, (N, C, H, W), jnp.float32)

    params = init_params(kp, in_feature)

    out1, out2 = nn_forward(x1, x2, params)
    jax.block_until_ready((out1, out2))

    assert out1.shape == (N, OUT) and out2.shape == (N, OUT)
    assert out1.dtype == jnp.float32 and out2.dtype == jnp.float32

    # Pure-JAX reference check (per-branch BN stats, like torch).
    w1, b1, gamma, beta, w2, b2 = params
    ref1 = _reference_forward_once(x1.reshape(N, -1), w1, b1, gamma, beta, w2, b2)
    ref2 = _reference_forward_once(x2.reshape(N, -1), w1, b1, gamma, beta, w2, b2)
    assert jnp.allclose(out1, ref1, rtol=1e-3, atol=1e-3)
    assert jnp.allclose(out2, ref2, rtol=1e-3, atol=1e-3)

    print("KERNEL_OK")
</pallas_src>

<mosaic_0001>
module attributes {stable_mosaic.version = 11 : i64} {
  func.func @_siamese_kernel(%arg0: i32, %arg1: memref<1x8x256xf32, #tpu.memory_space<vmem>>, %arg2: memref<256x384xf32, #tpu.memory_space<vmem>>, %arg3: memref<1x384xf32, #tpu.memory_space<vmem>>, %arg4: memref<1x384xf32, #tpu.memory_space<vmem>>, %arg5: memref<1x384xf32, #tpu.memory_space<vmem>>, %arg6: memref<384x128xf32, #tpu.memory_space<vmem>>, %arg7: memref<1x128xf32, #tpu.memory_space<vmem>>, %arg8: memref<1x8x128xf32, #tpu.memory_space<vmem>>) attributes {dimension_semantics = [#tpu.dimension_semantics<parallel>], iteration_bounds = array<i64: 2>, scalar_prefetch = 0 : i64, scratch_operands = 0 : i64, tpu.core_type = #tpu.core_type<tc>, window_params = [{transform_indices = @transform_0, window_bounds = array<i64: 1, 8, 256>}, {pipeline_mode = #tpu.pipeline_mode<synchronous>, transform_indices = @transform_1, window_bounds = array<i64: 256, 384>}, {pipeline_mode = #tpu.pipeline_mode<synchronous>, transform_indices = @transform_2, window_bounds = array<i64: 1, 384>}, {pipeline_mode = #tpu.pipeline_mode<synchronous>, transform_indices = @transform_3, window_bounds = array<i64: 1, 384>}, {pipeline_mode = #tpu.pipeline_mode<synchronous>, transform_indices = @transform_4, window_bounds = array<i64: 1, 384>}, {pipeline_mode = #tpu.pipeline_mode<synchronous>, transform_indices = @transform_5, window_bounds = array<i64: 384, 128>}, {pipeline_mode = #tpu.pipeline_mode<synchronous>, transform_indices = @transform_6, window_bounds = array<i64: 1, 128>}, {transform_indices = @transform_7, window_bounds = array<i64: 1, 8, 128>}]} {
    %c0 = arith.constant 0 : index
    %c0_0 = arith.constant 0 : index
    %c0_1 = arith.constant 0 : index
    %0 = vector.load %arg1[%c0, %c0_0, %c0_1] : memref<1x8x256xf32, #tpu.memory_space<vmem>>, vector<1x8x256xf32>
    %1 = vector.shape_cast %0 : vector<1x8x256xf32> to vector<8x256xf32>
    %c0_2 = arith.constant 0 : index
    %c0_3 = arith.constant 0 : index
    %2 = vector.load %arg2[%c0_2, %c0_3] : memref<256x384xf32, #tpu.memory_space<vmem>>, vector<256x384xf32>
    %cst = arith.constant dense<0.000000e+00> : vector<8x384xf32>
    %3 = tpu.matmul %1, %2, %cst {dimension_numbers = #tpu.dot_dimension_numbers<[1], [0], [0], [1], [0, 0, 1, 1], [], []>} : vector<8x256xf32>, vector<256x384xf32>, vector<8x384xf32> -> vector<8x384xf32>
    %c0_4 = arith.constant 0 : index
    %c0_5 = arith.constant 0 : index
    %4 = vector.load %arg3[%c0_4, %c0_5] : memref<1x384xf32, #tpu.memory_space<vmem>>, vector<1x384xf32>
    %5 = vector.broadcast %4 : vector<1x384xf32> to vector<8x384xf32>
    %6 = arith.addf %3, %5 : vector<8x384xf32>
    %cst_6 = arith.constant dense<0.000000e+00> : vector<384xf32>
    %7 = vector.multi_reduction <add>, %6, %cst_6 [0] : vector<8x384xf32> to vector<384xf32>
    %8 = vector.shape_cast %7 : vector<384xf32> to vector<1x384xf32>
    %9 = arith.mulf %6, %6 : vector<8x384xf32>
    %cst_7 = arith.constant dense<0.000000e+00> : vector<384xf32>
    %10 = vector.multi_reduction <add>, %9, %cst_7 [0] : vector<8x384xf32> to vector<384xf32>
    %11 = vector.shape_cast %10 : vector<384xf32> to vector<1x384xf32>
    %cst_8 = arith.constant 8.000000e+00 : f32
    %12 = vector.broadcast %cst_8 : f32 to vector<1x384xf32>
    %13 = arith.divf %8, %12 : vector<1x384xf32>
    %cst_9 = arith.constant 8.000000e+00 : f32
    %14 = vector.broadcast %cst_9 : f32 to vector<1x384xf32>
    %15 = arith.divf %11, %14 : vector<1x384xf32>
    %16 = arith.mulf %13, %13 : vector<1x384xf32>
    %17 = arith.subf %15, %16 : vector<1x384xf32>
    %cst_10 = arith.constant 0.000000e+00 : f32
    %18 = vector.broadcast %cst_10 : f32 to vector<1x384xf32>
    %19 = arith.maximumf %17, %18 : vector<1x384xf32>
    %cst_11 = arith.constant 9.99999974E-6 : f32
    %20 = vector.broadcast %cst_11 : f32 to vector<1x384xf32>
    %21 = arith.addf %19, %20 : vector<1x384xf32>
    %22 = math.rsqrt %21 : vector<1x384xf32>
    %23 = vector.broadcast %13 : vector<1x384xf32> to vector<8x384xf32>
    %24 = arith.subf %6, %23 : vector<8x384xf32>
    %c0_12 = arith.constant 0 : index
    %c0_13 = arith.constant 0 : index
    %25 = vector.load %arg4[%c0_12, %c0_13] : memref<1x384xf32, #tpu.memory_space<vmem>>, vector<1x384xf32>
    %26 = arith.mulf %22, %25 : vector<1x384xf32>
    %27 = vector.broadcast %26 : vector<1x384xf32> to vector<8x384xf32>
    %28 = arith.mulf %24, %27 : vector<8x384xf32>
    %c0_14 = arith.constant 0 : index
    %c0_15 = arith.constant 0 : index
    %29 = vector.load %arg5[%c0_14, %c0_15] : memref<1x384xf32, #tpu.memory_space<vmem>>, vector<1x384xf32>
    %30 = vector.broadcast %29 : vector<1x384xf32> to vector<8x384xf32>
    %31 = arith.addf %28, %30 : vector<8x384xf32>
    %cst_16 = arith.constant 0.000000e+00 : f32
    %32 = vector.broadcast %cst_16 : f32 to vector<8x384xf32>
    %33 = arith.maximumf %31, %32 : vector<8x384xf32>
    %c0_17 = arith.constant 0 : index
    %c0_18 = arith.constant 0 : index
    %34 = vector.load %arg6[%c0_17, %c0_18] : memref<384x128xf32, #tpu.memory_space<vmem>>, vector<384x128xf32>
    %cst_19 = arith.constant dense<0.000000e+00> : vector<8x128xf32>
    %35 = tpu.matmul %33, %34, %cst_19 {dimension_numbers = #tpu.dot_dimension_numbers<[1], [0], [0], [1], [0, 0, 1, 1], [], []>} : vector<8x384xf32>, vector<384x128xf32>, vector<8x128xf32> -> vector<8x128xf32>
    %c0_20 = arith.constant 0 : index
    %c0_21 = arith.constant 0 : index
    %36 = vector.load %arg7[%c0_20, %c0_21] : memref<1x128xf32, #tpu.memory_space<vmem>>, vector<1x128xf32>
    %37 = vector.broadcast %36 : vector<1x128xf32> to vector<8x128xf32>
    %38 = arith.addf %35, %37 : vector<8x128xf32>
    %c0_22 = arith.constant 0 : index
    %c0_23 = arith.constant 0 : index
    %c0_24 = arith.constant 0 : index
    %39 = vector.load %arg8[%c0_22, %c0_23, %c0_24] : memref<1x8x128xf32, #tpu.memory_space<vmem>>, vector<1x8x128xf32>
    %40 = vector.shape_cast %39 : vector<1x8x128xf32> to vector<8x128xf32>
    %41 = vector.shape_cast %38 : vector<8x128xf32> to vector<1x8x128xf32>
    tpu.vector_store %arg8[%c0_22, %c0_23, %c0_24], %41 {strides = array<i32>} : memref<1x8x128xf32, #tpu.memory_space<vmem>>, vector<1x8x128xf32>,
    return
  }
  func.func @transform_0(%arg0: i32) -> (i32, i32, i32) {
    %c0_i32 = arith.constant 0 : i32
    %c0_i32_0 = arith.constant 0 : i32
    %c0_i32_1 = arith.constant 0 : i32
    return %arg0, %c0_i32, %c0_i32_0 : i32, i32, i32
  }
  func.func @transform_1(%arg0: i32) -> (i32, i32) {
    %c0_i32 = arith.constant 0 : i32
    %c0_i32_0 = arith.constant 0 : i32
    %c0_i32_1 = arith.constant 0 : i32
    return %c0_i32, %c0_i32_0 : i32, i32
  }
  func.func @transform_2(%arg0: i32) -> (i32, i32) {
    %c0_i32 = arith.constant 0 : i32
    %c0_i32_0 = arith.constant 0 : i32
    %c0_i32_1 = arith.constant 0 : i32
    return %c0_i32, %c0_i32_0 : i32, i32
  }
  func.func @transform_3(%arg0: i32) -> (i32, i32) {
    %c0_i32 = arith.constant 0 : i32
    %c0_i32_0 = arith.constant 0 : i32
    %c0_i32_1 = arith.constant 0 : i32
    return %c0_i32, %c0_i32_0 : i32, i32
  }
  func.func @transform_4(%arg0: i32) -> (i32, i32) {
    %c0_i32 = arith.constant 0 : i32
    %c0_i32_0 = arith.constant 0 : i32
    %c0_i32_1 = arith.constant 0 : i32
    return %c0_i32, %c0_i32_0 : i32, i32
  }
  func.func @transform_5(%arg0: i32) -> (i32, i32) {
    %c0_i32 = arith.constant 0 : i32
    %c0_i32_0 = arith.constant 0 : i32
    %c0_i32_1 = arith.constant 0 : i32
    return %c0_i32, %c0_i32_0 : i32, i32
  }
  func.func @transform_6(%arg0: i32) -> (i32, i32) {
    %c0_i32 = arith.constant 0 : i32
    %c0_i32_0 = arith.constant 0 : i32
    %c0_i32_1 = arith.constant 0 : i32
    return %c0_i32, %c0_i32_0 : i32, i32
  }
  func.func @transform_7(%arg0: i32) -> (i32, i32, i32) {
    %c0_i32 = arith.constant 0 : i32
    %c0_i32_0 = arith.constant 0 : i32
    %c0_i32_1 = arith.constant 0 : i32
    return %arg0, %c0_i32, %c0_i32_0 : i32, i32, i32
  }
}

</mosaic_0001>

<bundles_post_ra>
// kernel: _forward_pair.1
= control target key start
LH: loop header
LB: loop body
LE: loop exit
PB: predicated region body
PF: predicated region fallthrough
CT: control target
= control target key end

     0   :  { %s1104_s24 = smov 0   ;;  %s1622_s0 = inlined_call_operand.vmem [shape: f32[2,8,256], index: 0, kind: input, shape index: {}]   ;;  %s1623_s1 = inlined_call_operand.vmem [shape: f32[256,384], index: 1, kind: input, shape index: {}]   ;;  %s1624_s2 = inlined_call_operand.vmem [shape: f32[1,384], index: 2, kind: input, shape index: {}]   ;;  %s1625_s3 = inlined_call_operand.vmem [shape: f32[1,384], index: 3, kind: input, shape index: {}]   ;;  %s1626_s4 = inlined_call_operand.vmem [shape: f32[1,384], index: 4, kind: input, shape index: {}]   ;;  %s1627_s5 = inlined_call_operand.vmem [shape: f32[384,128], index: 5, kind: input, shape index: {}]   ;;  %s1628_s6 = inlined_call_operand.vmem [shape: f32[1,128], index: 6, kind: input, shape index: {}]   ;;  %s1629_s7 = inlined_call_operand.vmem [shape: f32[2,8,128], index: 7, kind: output, shape index: {}]  }
   0x1 LB: > { %s904_s25 = sadd.s32 4294967295, %s1060_s24   ;;  %p908_p0 = scmp.ge.s32.totalorder %s1060_s24, 1  ;;  %s1060_s24 = sphi %s1104_s24, %s17_s24  }
   0x2   : > { %p237_p1 = scmp.lt.s32.totalorder %s1060_s24, 3 }
   0x4   : > { %p238_p2 = pnand %p908_p0, %p237_p1 }
   0x5   : > { %p1228_p3 = scmp.lt.s32.totalorder (!%p238_p2), %s904_s25, 1 }
   0x6   : > { %241 = sbr.rel (%p238_p2) target bundleno = 522 (0x20a), region = 48 }
   0xb   : > { %v325_v0 = vld [vmem:[%s1623_s1 + $0x170] sm:$0xff]  ;;  %v374_v1 = vld [vmem:[%s1623_s1 + $0x2f8] sm:$0xff]  ;;  %v324_v2 = vld [vmem:[%s1623_s1 + $0x168] sm:$0xff]  ;;  %s1632_s25 = smov (!%p1228_p3, %s904_s25), 1  ;;  %vm1063_vm0 = vmmov 0  }
   0xc   : > { %392 = vmatprep.subr.mxu0 %v325_v0  ;;  %916 = vmatprep.subr.mxu1 %v374_v1  ;;  %v326_v3 = vld [vmem:[%s1623_s1 + $0x178] sm:$0xff]  ;;  %v371_v5 = vld [vmem:[%s1623_s1 + $0x2e0] sm:$0xff]  ;;  %v321_v6 = vld [vmem:[%s1623_s1 + $0x150] sm:$0xff]  ;;  %s915_s30 = sshll.u32 %s1632_s25, 4 }
   0xd   : > { %v322_v4 = vld [vmem:[%s1623_s1 + $0x158] sm:$0xff]  ;;  %393 = vmatpush1.msra.mxu0 %v324_v2  ;;  %917 = vmatpush3.msra.mxu1 %v326_v3  ;;  %v323_v7 = vld [vmem:[%s1623_s1 + $0x160] sm:$0xff]  ;;  %v368_v9 = vld [vmem:[%s1623_s1 + $0x2c8] sm:$0xff]  ;;  %s272_s22 = scalar_lea.vmem %s1622_s0, %s915_s30  ;;  %s911_s30 = sshll.u32 %s1632_s25, 3 }
   0xe   : > { %v319_v8 = vld [vmem:[%s1623_s1 + $0x140] sm:$0xff]  ;;  %394 = vmatprep.subr.mxu0 %v322_v4  ;;  %918 = vmatprep.subr.mxu1 %v371_v5  ;;  %v318_v10 = vld [vmem:[%s1623_s1 + $0x138] sm:$0xff]  ;;  %v320_v11 = vld [vmem:[%s1623_s1 + $0x148] sm:$0xff]  ;;  %s276_s13 = scalar_lea.vmem %s1629_s7, %s911_s30 }
   0xf   : > { %395 = vmatpush1.msra.mxu0 %v321_v6  ;;  %919 = vmatpush3.msra.mxu1 %v323_v7  ;;  %v316_v12 = vld [vmem:[%s1623_s1 + $0x128] sm:$0xff]  ;;  %v365_v13 = vld [vmem:[%s1623_s1 + $0x2b0] sm:$0xff]  ;;  %v315_v14 = vld [vmem:[%s1623_s1 + $0x120] sm:$0xff] }
  0x10   : > { %396 = vmatprep.subr.mxu0 %v319_v8  ;;  %920 = vmatprep.subr.mxu1 %v368_v9  ;;  %v317_v15 = vld [vmem:[%s1623_s1 + $0x130] sm:$0xff]  ;;  %v362_v17 = vld [vmem:[%s1623_s1 + $0x298] sm:$0xff]  ;;  %v312_v18 = vld [vmem:[%s1623_s1 + $0x108] sm:$0xff] }
  0x11   : > { %397 = vmatpush1.msra.mxu0 %v318_v10  ;;  %921 = vmatpush3.msra.mxu1 %v320_v11  ;;  %v313_v16 = vld [vmem:[%s1623_s1 + $0x110] sm:$0xff]  ;;  %v314_v19 = vld [vmem:[%s1623_s1 + $0x118] sm:$0xff]  ;;  %v359_v21 = vld [vmem:[%s1623_s1 + $0x280] sm:$0xff] }
  0x12   : > { %398 = vmatprep.subr.mxu0 %v316_v12  ;;  %922 = vmatprep.subr.mxu1 %v365_v13  ;;  %v310_v20 = vld [vmem:[%s1623_s1 + $0xf8] sm:$0xff]  ;;  %v309_v22 = vld [vmem:[%s1623_s1 + $0xf0] sm:$0xff]  ;;  %v311_v23 = vld [vmem:[%s1623_s1 + $0x100] sm:$0xff] }
  0x13   : > { %399 = vmatpush1.msra.mxu0 %v315_v14  ;;  %923 = vmatpush3.msra.mxu1 %v317_v15  ;;  %v307_v24 = vld [vmem:[%s1623_s1 + $0xe0] sm:$0xff]  ;;  %v356_v25 = vld [vmem:[%s1623_s1 + $0x268] sm:$0xff]  ;;  %v306_v26 = vld [vmem:[%s1623_s1 + $0xd8] sm:$0xff] }
  0x14   : > { %400 = vmatprep.subr.mxu0 %v313_v16  ;;  %924 = vmatprep.subr.mxu1 %v362_v17  ;;  %v308_v27 = vld [vmem:[%s1623_s1 + $0xe8] sm:$0xff]  ;;  %v353_v29 = vld [vmem:[%s1623_s1 + $0x250] sm:$0xff]  ;;  %v303_v30 = vld [vmem:[%s1623_s1 + $0xc0] sm:$0xff] }
  0x15   : > { %401 = vmatpush1.msra.mxu0 %v312_v18  ;;  %925 = vmatpush3.msra.mxu1 %v314_v19  ;;  %v304_v28 = vld [vmem:[%s1623_s1 + $0xc8] sm:$0xff]  ;;  %v305_v31 = vld [vmem:[%s1623_s1 + $0xd0] sm:$0xff]  ;;  %v350_v33 = vld [vmem:[%s1623_s1 + $0x238] sm:$0xff] }
  0x16   : > { %402 = vmatprep.subr.mxu0 %v310_v20  ;;  %926 = vmatprep.subr.mxu1 %v359_v21  ;;  %v301_v32 = vld [vmem:[%s1623_s1 + $0xb0] sm:$0xff]  ;;  %v300_v34 = vld [vmem:[%s1623_s1 + $0xa8] sm:$0xff]  ;;  %v302_v35 = vld [vmem:[%s1623_s1 + $0xb8] sm:$0xff] }
  0x17   : > { %403 = vmatpush1.msra.mxu0 %v309_v22  ;;  %927 = vmatpush3.msra.mxu1 %v311_v23  ;;  %v298_v36 = vld [vmem:[%s1623_s1 + $0x98] sm:$0xff]  ;;  %v347_v37 = vld [vmem:[%s1623_s1 + $0x220] sm:$0xff]  ;;  %v297_v38 = vld [vmem:[%s1623_s1 + $0x90] sm:$0xff] }
  0x18   : > { %404 = vmatprep.subr.mxu0 %v307_v24  ;;  %928 = vmatprep.subr.mxu1 %v356_v25  ;;  %v299_v39 = vld [vmem:[%s1623_s1 + $0xa0] sm:$0xff]  ;;  %v344_v41 = vld [vmem:[%s1623_s1 + $0x208] sm:$0xff]  ;;  %v294_v42 = vld [vmem:[%s1623_s1 + $0x78] sm:$0xff] }
  0x19   : > { %405 = vmatpush1.msra.mxu0 %v306_v26  ;;  %929 = vmatpush3.msra.mxu1 %v308_v27  ;;  %v295_v40 = vld [vmem:[%s1623_s1 + $0x80] sm:$0xff]  ;;  %v296_v43 = vld [vmem:[%s1623_s1 + $0x88] sm:$0xff]  ;;  %v341_v45 = vld [vmem:[%s1623_s1 + $0x1f0] sm:$0xff] }
  0x1a   : > { %406 = vmatprep.subr.mxu0 %v304_v28  ;;  %930 = vmatprep.subr.mxu1 %v353_v29  ;;  %v292_v44 = vld [vmem:[%s1623_s1 + $0x68] sm:$0xff]  ;;  %v291_v46 = vld [vmem:[%s1623_s1 + $0x60] sm:$0xff]  ;;  %v293_v47 = vld [vmem:[%s1623_s1 + $0x70] sm:$0xff] }
  0x1b   : > { %407 = vmatpush1.msra.mxu0 %v303_v30  ;;  %931 = vmatpush3.msra.mxu1 %v305_v31  ;;  %v289_v48 = vld [vmem:[%s1623_s1 + $0x50] sm:$0xff]  ;;  %v338_v49 = vld [vmem:[%s1623_s1 + $0x1d8] sm:$0xff]  ;;  %v288_v50 = vld [vmem:[%s1623_s1 + $0x48] sm:$0xff] }
  0x1c   : > { %408 = vmatprep.subr.mxu0 %v301_v32  ;;  %932 = vmatprep.subr.mxu1 %v350_v33  ;;  %v290_v51 = vld [vmem:[%s1623_s1 + $0x58] sm:$0xff]  ;;  %v335_v53 = vld [vmem:[%s1623_s1 + $0x1c0] sm:$0xff]  ;;  %v285_v54 = vld [vmem:[%s1623_s1 + $0x30] sm:$0xff] }
  0x1d   : > { %409 = vmatpush1.msra.mxu0 %v300_v34  ;;  %933 = vmatpush3.msra.mxu1 %v302_v35  ;;  %v286_v52 = vld [vmem:[%s1623_s1 + $0x38] sm:$0xff]  ;;  %v287_v55 = vld [vmem:[%s1623_s1 + $0x40] sm:$0xff]  ;;  %v332_v57 = vld [vmem:[%s1623_s1 + $0x1a8] sm:$0xff]  ;;  %v1062_v34 = vmov 0.0  }
  0x1e   : > { %410 = vmatprep.subr.mxu0 %v298_v36  ;;  %934 = vmatprep.subr.mxu1 %v347_v37  ;;  %v283_v56 = vld [vmem:[%s1623_s1 + $0x20] sm:$0xff]  ;;  %v282_v58 = vld [vmem:[%s1623_s1 + $0x18] sm:$0xff]  ;;  %v284_v59 = vld [vmem:[%s1623_s1 + $0x28] sm:$0xff] }
  0x1f   : > { %411 = vmatpush1.msra.mxu0 %v297_v38  ;;  %935 = vmatpush3.msra.mxu1 %v299_v39  ;;  %v280_v60 = vld [vmem:[%s1623_s1 + $0x8] sm:$0xff]  ;;  %v329_v61 = vld [vmem:[%s1623_s1 + $0x190] sm:$0xff]  ;;  %v279_v62 = vld [vmem:[%s1623_s1] sm:$0xff] }
  0x20   : > { %412 = vmatprep.subr.mxu0 %v295_v40  ;;  %936 = vmatprep.subr.mxu1 %v344_v41  ;;  %v281_v63 = vld [vmem:[%s1623_s1 + $0x10] sm:$0xff]  ;;  %v278_v0 = vld [vmem:[%s272_s22 + $0x8] sm:$0xff]  ;;  %v1323_v2 = vld [vmem:[%s272_s22] sm:$0xff] }
  0x21   : > { %413 = vmatpush1.msra.mxu0 %v294_v42  ;;  %937 = vmatpush3.msra.mxu1 %v296_v43  ;;  %v373_v1 = vld [vmem:[%s1623_s1 + $0x2f0] sm:$0xff]  ;;  %v372_v3 = vld [vmem:[%s1623_s1 + $0x2e8] sm:$0xff]  ;;  %v370_v4 = vld [vmem:[%s1623_s1 + $0x2d8] sm:$0xff] }
  0x22   : > { %414 = vmatprep.subr.mxu0 %v292_v44  ;;  %938 = vmatprep.subr.mxu1 %v341_v45  ;;  %v369_v5 = vld [vmem:[%s1623_s1 + $0x2d0] sm:$0xff]  ;;  %v367_v6 = vld [vmem:[%s1623_s1 + $0x2c0] sm:$0xff]  ;;  %v366_v7 = vld [vmem:[%s1623_s1 + $0x2b8] sm:$0xff] }
  0x23   : > { %415 = vmatpush1.msra.mxu0 %v291_v46  ;;  %939 = vmatpush3.msra.mxu1 %v293_v47  ;;  %v364_v8 = vld [vmem:[%s1623_s1 + $0x2a8] sm:$0xff]  ;;  %v363_v9 = vld [vmem:[%s1623_s1 + $0x2a0] sm:$0xff]  ;;  %v361_v10 = vld [vmem:[%s1623_s1 + $0x290] sm:$0xff] }
  0x24   : > { %416 = vmatprep.subr.mxu0 %v289_v48  ;;  %940 = vmatprep.subr.mxu1 %v338_v49  ;;  %v360_v11 = vld [vmem:[%s1623_s1 + $0x288] sm:$0xff]  ;;  %v358_v12 = vld [vmem:[%s1623_s1 + $0x278] sm:$0xff]  ;;  %v357_v13 = vld [vmem:[%s1623_s1 + $0x270] sm:$0xff] }
  0x25   : > { %417 = vmatpush1.msra.mxu0 %v288_v50  ;;  %941 = vmatpush3.msra.mxu1 %v290_v51  ;;  %v355_v14 = vld [vmem:[%s1623_s1 + $0x260] sm:$0xff]  ;;  %v354_v15 = vld [vmem:[%s1623_s1 + $0x258] sm:$0xff]  ;;  %v352_v16 = vld [vmem:[%s1623_s1 + $0x248] sm:$0xff] }
  0x26   : > { %418 = vmatprep.subr.mxu0 %v286_v52  ;;  %942 = vmatprep.subr.mxu1 %v335_v53  ;;  %v351_v17 = vld [vmem:[%s1623_s1 + $0x240] sm:$0xff]  ;;  %v349_v18 = vld [vmem:[%s1623_s1 + $0x230] sm:$0xff]  ;;  %v348_v19 = vld [vmem:[%s1623_s1 + $0x228] sm:$0xff] }
  0x27   : > { %419 = vmatpush1.msra.mxu0 %v285_v54  ;;  %943 = vmatpush3.msra.mxu1 %v287_v55  ;;  %v346_v20 = vld [vmem:[%s1623_s1 + $0x218] sm:$0xff]  ;;  %v345_v21 = vld [vmem:[%s1623_s1 + $0x210] sm:$0xff]  ;;  %v343_v22 = vld [vmem:[%s1623_s1 + $0x200] sm:$0xff] }
  0x28   : > { %420 = vmatprep.subr.mxu0 %v283_v56  ;;  %944 = vmatprep.subr.mxu1 %v332_v57  ;;  %v342_v23 = vld [vmem:[%s1623_s1 + $0x1f8] sm:$0xff]  ;;  %v340_v24 = vld [vmem:[%s1623_s1 + $0x1e8] sm:$0xff]  ;;  %v339_v25 = vld [vmem:[%s1623_s1 + $0x1e0] sm:$0xff] }
  0x29   : > { %421 = vmatpush1.msra.mxu0 %v282_v58  ;;  %945 = vmatpush3.msra.mxu1 %v284_v59  ;;  %v337_v26 = vld [vmem:[%s1623_s1 + $0x1d0] sm:$0xff]  ;;  %v336_v27 = vld [vmem:[%s1623_s1 + $0x1c8] sm:$0xff]  ;;  %v334_v28 = vld [vmem:[%s1623_s1 + $0x1b8] sm:$0xff] }
  0x2a   : > { %422 = vmatprep.subr.mxu0 %v280_v60  ;;  %946 = vmatprep.subr.mxu1 %v329_v61  ;;  %v333_v29 = vld [vmem:[%s1623_s1 + $0x1b0] sm:$0xff]  ;;  %v331_v30 = vld [vmem:[%s1623_s1 + $0x1a0] sm:$0xff]  ;;  %v330_v31 = vld [vmem:[%s1623_s1 + $0x198] sm:$0xff] }
  0x2b   : > { %423 = vmatpush1.msra.mxu0 %v279_v62  ;;  %947 = vmatpush3.msra.mxu1 %v281_v63  ;;  %v328_v32 = vld [vmem:[%s1623_s1 + $0x188] sm:$0xff]  ;;  %v327_v33 = vld [vmem:[%s1623_s1 + $0x180] sm:$0xff]  ;;  %v702_v35 = vld [vmem:[%s1627_s5 + $0x178] sm:$0xff] }
  0x2c   : > { %527 = vmatprep.mubr.f32.mxu1 %v278_v0  ;;  %424 = vmatprep.subr.mxu0 %v373_v1  ;;  %v701_v36 = vld [vmem:[%s1627_s5 + $0x170] sm:$0xff]  ;;  %v700_v37 = vld [vmem:[%s1627_s5 + $0x168] sm:$0xff]  ;;  %v699_v38 = vld [vmem:[%s1627_s5 + $0x160] sm:$0xff] }
  0x2d   : > { %528 = vmatmul.mubr.f32.vlgmr.msra.gmra.mxu1 %v1323_v2  ;;  %425 = vmatpush2.msra.mxu0 %v372_v3  ;;  %v698_v39 = vld [vmem:[%s1627_s5 + $0x158] sm:$0xff]  ;;  %v697_v40 = vld [vmem:[%s1627_s5 + $0x150] sm:$0xff]  ;;  %v696_v41 = vld [vmem:[%s1627_s5 + $0x148] sm:$0xff] }
  0x2e   : > { %426 = vmatprep.subr.mxu0 %v370_v4  ;;  %456 = vmatprep.mubr.f32.mxu0 %v278_v0  ;;  %v695_v42 = vld [vmem:[%s1627_s5 + $0x140] sm:$0xff]  ;;  %v694_v43 = vld [vmem:[%s1627_s5 + $0x138] sm:$0xff]  ;;  %v693_v44 = vld [vmem:[%s1627_s5 + $0x130] sm:$0xff] }
  0x2f   : > { %427 = vmatpush2.msra.mxu0 %v369_v5  ;;  %v692_v45 = vld [vmem:[%s1627_s5 + $0x128] sm:$0xff]  ;;  %v691_v46 = vld [vmem:[%s1627_s5 + $0x120] sm:$0xff]  ;;  %v690_v47 = vld [vmem:[%s1627_s5 + $0x118] sm:$0xff] }
  0x30   : > { %428 = vmatprep.subr.mxu0 %v367_v6  ;;  %v689_v48 = vld [vmem:[%s1627_s5 + $0x110] sm:$0xff]  ;;  %v688_v49 = vld [vmem:[%s1627_s5 + $0x108] sm:$0xff]  ;;  %v686_v50 = vld [vmem:[%s1627_s5 + $0xf8] sm:$0xff] }
  0x31   : > { %429 = vmatpush2.msra.mxu0 %v366_v7  ;;  %v687_v51 = vld [vmem:[%s1627_s5 + $0x100] sm:$0xff]  ;;  %951 = vmatprep.subr.mxu1 %v686_v50  ;;  %v670_v52 = vld [vmem:[%s1627_s5 + $0x78] sm:$0xff]  ;;  %v685_v53 = vld [vmem:[%s1627_s5 + $0xf0] sm:$0xff] }
  0x32   : > { %430 = vmatprep.subr.mxu0 %v364_v8  ;;  %952 = vmatpush3.msra.mxu1 %v670_v52  ;;  %v669_v54 = vld [vmem:[%s1627_s5 + $0x70] sm:$0xff]  ;;  %v684_v55 = vld [vmem:[%s1627_s5 + $0xe8] sm:$0xff]  ;;  %v683_v57 = vld [vmem:[%s1627_s5 + $0xe0] sm:$0xff] }
  0x33   : > { %431 = vmatpush2.msra.mxu0 %v363_v9  ;;  %953 = vmatprep.subr.mxu1 %v685_v53  ;;  %v668_v56 = vld [vmem:[%s1627_s5 + $0x68] sm:$0xff]  ;;  %v667_v58 = vld [vmem:[%s1627_s5 + $0x60] sm:$0xff]  ;;  %v682_v59 = vld [vmem:[%s1627_s5 + $0xd8] sm:$0xff] }
  0x34   : > { %432 = vmatprep.subr.mxu0 %v361_v10  ;;  %954 = vmatpush3.msra.mxu1 %v669_v54  ;;  %v666_v60 = vld [vmem:[%s1627_s5 + $0x58] sm:$0xff]  ;;  %v681_v61 = vld [vmem:[%s1627_s5 + $0xd0] sm:$0xff]  ;;  %v680_v63 = vld [vmem:[%s1627_s5 + $0xc8] sm:$0xff] }
  0x35   : > { %433 = vmatpush2.msra.mxu0 %v360_v11  ;;  %955 = vmatprep.subr.mxu1 %v684_v55  ;;  %v665_v62 = vld [vmem:[%s1627_s5 + $0x50] sm:$0xff]  ;;  %v664_v0 = vld [vmem:[%s1627_s5 + $0x48] sm:$0xff]  ;;  %v679_v1 = vld [vmem:[%s1627_s5 + $0xc0] sm:$0xff] }
  0x36   : > { %434 = vmatprep.subr.mxu0 %v358_v12  ;;  %956 = vmatpush3.msra.mxu1 %v668_v56  ;;  %v678_v3 = vld [vmem:[%s1627_s5 + $0xb8] sm:$0xff]  ;;  %v677_v5 = vld [vmem:[%s1627_s5 + $0xb0] sm:$0xff]  ;;  %v676_v7 = vld [vmem:[%s1627_s5 + $0xa8] sm:$0xff] }
  0x37   : > { %435 = vmatpush2.msra.mxu0 %v357_v13  ;;  %957 = vmatprep.subr.mxu1 %v683_v57  ;;  %v662_v4 = vld [vmem:[%s1627_s5 + $0x38] sm:$0xff]  ;;  %v661_v6 = vld [vmem:[%s1627_s5 + $0x30] sm:$0xff]  ;;  %v660_v8 = vld [vmem:[%s1627_s5 + $0x28] sm:$0xff] }
  0x38   : > { %436 = vmatprep.subr.mxu0 %v355_v14  ;;  %958 = vmatpush3.msra.mxu1 %v667_v58  ;;  %v675_v9 = vld [vmem:[%s1627_s5 + $0xa0] sm:$0xff]  ;;  %v674_v11 = vld [vmem:[%s1627_s5 + $0x98] sm:$0xff]  ;;  %v673_v13 = vld [vmem:[%s1627_s5 + $0x90] sm:$0xff] }
  0x39   : > { %437 = vmatpush2.msra.mxu0 %v354_v15  ;;  %959 = vmatprep.subr.mxu1 %v682_v59  ;;  %v659_v10 = vld [vmem:[%s1627_s5 + $0x20] sm:$0xff]  ;;  %v658_v12 = vld [vmem:[%s1627_s5 + $0x18] sm:$0xff]  ;;  %v657_v14 = vld [vmem:[%s1627_s5 + $0x10] sm:$0xff] }
  0x3a   : > { %438 = vmatprep.subr.mxu0 %v352_v16  ;;  %960 = vmatpush3.msra.mxu1 %v666_v60  ;;  %v672_v15 = vld [vmem:[%s1627_s5 + $0x88] sm:$0xff]  ;;  %v597_v57 = vld [vmem:[%s1625_s3] sm:$0x7] }
  0x3b   : > { %439 = vmatpush2.msra.mxu0 %v351_v17  ;;  %961 = vmatprep.subr.mxu1 %v681_v61  ;;  %v656_v16 = vld [vmem:[%s1627_s5 + $0x8] sm:$0xff]  ;;  %v671_v17 = vld [vmem:[%s1627_s5 + $0x80] sm:$0xff] }
  0x3c   : > { %440 = vmatprep.subr.mxu0 %v349_v18  ;;  %962 = vmatpush3.msra.mxu1 %v665_v62  ;;  %v655_v18 = vld [vmem:[%s1627_s5] sm:$0xff] }
  0x3d   : > { %441 = vmatpush2.msra.mxu0 %v348_v19  ;;  %963 = vmatprep.subr.mxu1 %v680_v63  ;;  %v377_v19 = vlaneseq }
  0x3e   : > { %442 = vmatprep.subr.mxu0 %v346_v20  ;;  %964 = vmatpush3.msra.mxu1 %v664_v0 }
  0x3f   : > { %443 = vmatpush2.msra.mxu0 %v345_v21  ;;  %965 = vmatprep.subr.mxu1 %v679_v1  ;;  %v378_v20 = vshrl.u32 %v377_v19, 7 }
  0x40   : > { %444 = vmatprep.subr.mxu0 %v343_v22  ;;  %v375_v22 = vld [vmem:[%s1624_s2] sm:$0x7] }
  0x41   : > { %445 = vmatpush2.msra.mxu0 %v342_v23  ;;  %v1564_v21 = vsub.s32 2, %v378_v20 }
  0x42   : > { %446 = vmatprep.subr.mxu0 %v340_v24 }
  0x43   : > { %447 = vmatpush2.msra.mxu0 %v339_v25  ;;  %v388_v24 = vrot.slane %v375_v22, %v1564_v21 }
  0x44   : > { %448 = vmatprep.subr.mxu0 %v337_v26 }
  0x45   : > { %449 = vmatpush2.msra.mxu0 %v336_v27 }
  0x46   : > { %450 = vmatprep.subr.mxu0 %v334_v28 }
  0x47   : > { %451 = vmatpush2.msra.mxu0 %v333_v29 }
  0x48   : > { %452 = vmatprep.subr.mxu0 %v331_v30 }
  0x49   : > { %453 = vmatpush2.msra.mxu0 %v330_v31 }
  0x4a   : > { %454 = vmatprep.subr.mxu0 %v328_v32 }
  0x4b   : > { %455 = vmatpush2.msra.mxu0 %v327_v33 }
  0x4c   : > { %457 = vmatmul.mubr.f32.vlgmr.msra.gmra.mxu0 %v1323_v2  ;;  %1003 = vmatprep.subr.mxu0 %v1062_v34  ;;  %v663_v2 = vld [vmem:[%s1627_s5 + $0x40] sm:$0xff] }
  0x4d   : > { %1004 = vmatpush3.msra.mxu0 %v702_v35  ;;  %1035 = vmatprep.mubr.msk.f32.mxu0 %vm1063_vm0, %v1062_v34 }
  0x4e   : > { %1005 = vmatprep.subr.mxu0 %v1062_v34  ;;  %966 = vmatpush3.msra.mxu1 %v663_v2  ;;  %v610_v2 = vrot.slane %v597_v57, %v1564_v21 }
  0x4f   : > { %1006 = vmatpush3.msra.mxu0 %v701_v36  ;;  %967 = vmatprep.subr.mxu1 %v678_v3 }
  0x50   : > { %1007 = vmatprep.subr.mxu0 %v1062_v34  ;;  %968 = vmatpush3.msra.mxu1 %v662_v4 }
  0x51   : > { %1008 = vmatpush3.msra.mxu0 %v700_v37  ;;  %969 = vmatprep.subr.mxu1 %v677_v5 }
  0x52   : > { %1009 = vmatprep.subr.mxu0 %v1062_v34  ;;  %970 = vmatpush3.msra.mxu1 %v661_v6 }
  0x53   : > { %1010 = vmatpush3.msra.mxu0 %v699_v38  ;;  %971 = vmatprep.subr.mxu1 %v676_v7 }
  0x54   : > { %1011 = vmatprep.subr.mxu0 %v1062_v34  ;;  %972 = vmatpush3.msra.mxu1 %v660_v8 }
  0x55   : > { %1012 = vmatpush3.msra.mxu0 %v698_v39  ;;  %973 = vmatprep.subr.mxu1 %v675_v9 }
  0x56   : > { %1013 = vmatprep.subr.mxu0 %v1062_v34  ;;  %974 = vmatpush3.msra.mxu1 %v659_v10 }
  0x57   : > { %1014 = vmatpush3.msra.mxu0 %v697_v40  ;;  %975 = vmatprep.subr.mxu1 %v674_v11 }
  0x58   : > { %1015 = vmatprep.subr.mxu0 %v1062_v34  ;;  %976 = vmatpush3.msra.mxu1 %v658_v12  ;;  %v632_v12 = vld [vmem:[%s1626_s4] sm:$0x7] }
  0x59   : > { %1016 = vmatpush3.msra.mxu0 %v696_v41  ;;  %977 = vmatprep.subr.mxu1 %v673_v13 }
  0x5a   : > { %1017 = vmatprep.subr.mxu0 %v1062_v34  ;;  %978 = vmatpush3.msra.mxu1 %v657_v14 }
  0x5b   : > { %1018 = vmatpush3.msra.mxu0 %v695_v42  ;;  %979 = vmatprep.subr.mxu1 %v672_v15 }
  0x5c   : > { %1019 = vmatprep.subr.mxu0 %v1062_v34  ;;  %980 = vmatpush3.msra.mxu1 %v656_v16 }
  0x5d   : > { %1020 = vmatpush3.msra.mxu0 %v694_v43  ;;  %981 = vmatprep.subr.mxu1 %v671_v17 }
  0x5e   : > { %1021 = vmatprep.subr.mxu0 %v1062_v34  ;;  %982 = vmatpush3.msra.mxu1 %v655_v18 }
  0x5f   : > { %1022 = vmatpush3.msra.mxu0 %v693_v44 }
  0x60   : > { %1023 = vmatprep.subr.mxu0 %v1062_v34 }
  0x61   : > { %1024 = vmatpush3.msra.mxu0 %v692_v45  ;;  %v1576_v45 = vsub.s32 0, %v378_v20 }
  0x62   : > { %1025 = vmatprep.subr.mxu0 %v1062_v34 }
  0x63   : > { %1026 = vmatpush3.msra.mxu0 %v691_v46 }
  0x64   : > { %1027 = vmatprep.subr.mxu0 %v1062_v34 }
  0x65   : > { %1028 = vmatpush3.msra.mxu0 %v690_v47  ;;  %v1578_v47 = vsub.s32 1, %v378_v20  ;;  %v645_v20 = vrot.slane %v632_v12, %v1564_v21 }
  0x66   : > { %1029 = vmatprep.subr.mxu0 %v1062_v34 }
  0x67   : > { %1030 = vmatpush3.msra.mxu0 %v689_v48  ;;  %v384_v50 = vrot.slane %v375_v22, %v1578_v47 }
  0x68   : > { %1031 = vmatprep.subr.mxu0 %v1062_v34 }
  0x69   : > { %1032 = vmatpush3.msra.mxu0 %v688_v49  ;;  %v380_v49 = vrot.slane %v375_v22, %v1576_v45 }
  0x6a   : > { %1033 = vmatprep.subr.mxu0 %v1062_v34 }
  0x6b   : > { %1034 = vmatpush3.msra.mxu0 %v687_v51 }
  0xed   : > { %v948_v23 = vpop.f32.mrf.mxu1 }
  0xef   : > { %v949_v25 = vpop.f32.mrf.mxu1 }
  0xf0   : > { %v950_v26 = vadd.f32 %v949_v25, %v948_v23 }
  0xf2   : > { %v1570_v27 = vadd.f32 %v950_v26, %v388_v24 }
  0xf4   : > { %v545_v28 = vrot.slane %v1570_v27, 4  ;;  %v553_v29 = vmul.f32 %v1570_v27, %v1570_v27 }
  0xf6   : > { %v546_v30 = vadd.f32 %v545_v28, %v1570_v27  ;;  %v566_v31 = vrot.slane %v553_v29, 4 }
  0xf8   : > { %v547_v32 = vrot.slane %v546_v30, 2  ;;  %v567_v33 = vadd.f32 %v566_v31, %v553_v29 }
  0xfa   : > { %v548_v34 = vadd.f32 %v547_v32, %v546_v30  ;;  %v568_v35 = vrot.slane %v567_v33, 2 }
  0xfc   : > { %v549_v36 = vrot.slane %v548_v34, 1  ;;  %v569_v37 = vadd.f32 %v568_v35, %v567_v33 }
  0xfe   : > { %v550_v38 = vadd.f32 %v549_v36, %v548_v34  ;;  %v570_v39 = vrot.slane %v569_v37, 1 }
 0x100   : > { %v571_v40 = vadd.f32 %v570_v39, %v569_v37  ;;  %v575_v41 = vmul.f32 0.125, %v550_v38 }
 0x102   : > { %v578_v42 = vmul.f32 0.125, %v571_v40  ;;  %v581_v43 = vmul.f32 %v575_v41, %v575_v41  ;;  %v596_v18 = vsub.f32 %v1570_v27, %v575_v41  ;;  %v602_v40 = vrot.slane %v597_v57, %v1576_v45 }
 0x104   : > { %v584_v44 = vsub.f32 %v578_v42, %v581_v43  ;;  %v606_v42 = vrot.slane %v597_v57, %v1578_v47 }
 0x106   : > { %v587_v46 = vmax.f32 %v584_v44, 0.0 }
 0x108   : > { %v590_v48 = vadd.f32 1e-05, %v587_v46 }
 0x10a   : > { %1048 = vrsqrt.f32 %v590_v48 }
 0x10c   : > { %v458_v51 = vpop.f32.mrf.mxu0 }
 0x10d   : > { %v1582_v52 = vadd.f32 %v458_v51, %v380_v49  ;;  %v637_v51 = vrot.slane %v632_v12, %v1576_v45 }
 0x10e   : > { %v460_v53 = vpop.f32.mrf.mxu0 }
 0x10f   : > { %v533_v54 = vrot.slane %v1582_v52, 4  ;;  %v551_v55 = vmul.f32 %v1582_v52, %v1582_v52  ;;  %v1587_v56 = vadd.f32 %v460_v53, %v384_v50 }
 0x111   : > { %v534_v58 = vadd.f32 %v533_v54, %v1582_v52  ;;  %v554_v59 = vrot.slane %v551_v55, 4  ;;  %v539_v60 = vrot.slane %v1587_v56, 4  ;;  %v552_v61 = vmul.f32 %v1587_v56, %v1587_v56 }
 0x113   : > { %v535_v62 = vrot.slane %v534_v58, 2  ;;  %v555_v63 = vadd.f32 %v554_v59, %v551_v55  ;;  %v540_v0 = vadd.f32 %v539_v60, %v1587_v56  ;;  %v560_v1 = vrot.slane %v552_v61, 4 }
 0x114   : > { %v641_v55 = vrot.slane %v632_v12, %v1578_v47 }
 0x115   : > { %v536_v3 = vadd.f32 %v535_v62, %v534_v58  ;;  %v556_v4 = vrot.slane %v555_v63, 2  ;;  %v541_v5 = vrot.slane %v540_v0, 2  ;;  %v561_v6 = vadd.f32 %v560_v1, %v552_v61 }
 0x117   : > { %v1049_v7 = vpop.eup %1048  ;;  %v537_v8 = vrot.slane %v536_v3, 1  ;;  %v557_v9 = vadd.f32 %v556_v4, %v555_v63  ;;  %v542_v10 = vadd.f32 %v541_v5, %v540_v0  ;;  %v562_v11 = vrot.slane %v561_v6, 2  ;;  %v912_v0 = vld [vmem:[%s1628_s6] ss:$0 sm:$0xff] }
 0x118   : > { %v616_v13 = vmul.f32 %v1049_v7, %v610_v2 }
 0x119   : > { %v538_v14 = vadd.f32 %v537_v8, %v536_v3  ;;  %v558_v15 = vrot.slane %v557_v9, 1  ;;  %v543_v16 = vrot.slane %v542_v10, 1  ;;  %v563_v17 = vadd.f32 %v562_v11, %v561_v6 }
 0x11a   : > { %v628_v19 = vrot.slane %v616_v13, %v1576_v45 }
 0x11b   : > { %v559_v22 = vadd.f32 %v558_v15, %v557_v9  ;;  %v573_v23 = vmul.f32 0.125, %v538_v14  ;;  %v564_v24 = vrot.slane %v563_v17, 1  ;;  %v544_v25 = vadd.f32 %v543_v16, %v542_v10 }
 0x11c   : > { %v631_v26 = vmul.f32 %v628_v19, %v596_v18 }
 0x11d   : > { %v576_v28 = vmul.f32 0.125, %v559_v22  ;;  %v579_v29 = vmul.f32 %v573_v23, %v573_v23  ;;  %v565_v30 = vadd.f32 %v564_v24, %v563_v17  ;;  %v574_v32 = vmul.f32 0.125, %v544_v25 }
 0x11e   : > { %v651_v31 = vadd.f32 %v645_v20, %v631_v26  ;;  %v594_v46 = vsub.f32 %v1582_v52, %v573_v23 }
 0x11f   : > { %v582_v33 = vsub.f32 %v576_v28, %v579_v29  ;;  %v577_v34 = vmul.f32 0.125, %v565_v30  ;;  %v580_v36 = vmul.f32 %v574_v32, %v574_v32  ;;  %v595_v53 = vsub.f32 %v1587_v56, %v574_v32 }
 0x120   : > { %v654_v35 = vmax.f32 %v651_v31, 0.0 }
 0x121   : > { %v585_v37 = vmax.f32 %v582_v33, 0.0  ;;  %v583_v27 = vsub.f32 %v577_v34, %v580_v36 }
 0x122   : > { %1036 = vmatmul.mubr.f32.vlgmr.msra.gmra.mxu0 %v654_v35 }
 0x123   : > { %v588_v38 = vadd.f32 1e-05, %v585_v37  ;;  %v586_v39 = vmax.f32 %v583_v27, 0.0 }
 0x125   : > { %1050 = vrsqrt.f32 %v588_v38  ;;  %v589_v21 = vadd.f32 1e-05, %v586_v39 }
 0x127   : > { %1052 = vrsqrt.f32 %v589_v21 }
 0x132   : > { %v1051_v41 = vpop.eup %1050 }
 0x133   : > { %v614_v43 = vmul.f32 %v1051_v41, %v602_v40 }
 0x134   : > { %v1053_v44 = vpop.eup %1052 }
 0x135   : > { %v620_v48 = vrot.slane %v614_v43, %v1576_v45  ;;  %v615_v49 = vmul.f32 %v1053_v44, %v606_v42 }
 0x137   : > { %v629_v50 = vmul.f32 %v620_v48, %v594_v46  ;;  %v624_v54 = vrot.slane %v615_v49, %v1576_v45 }
 0x139   : > { %v630_v58 = vmul.f32 %v624_v54, %v595_v53  ;;  %v649_v59 = vadd.f32 %v637_v51, %v629_v50 }
 0x13b   : > { %v650_v57 = vadd.f32 %v641_v55, %v630_v58  ;;  %v652_v61 = vmax.f32 %v649_v59, 0.0 }
 0x13d   : > { %v653_v60 = vmax.f32 %v650_v57, 0.0 }
 0x13f   : > { %774 = vmatprep.mubr.f32.mxu1 %v653_v60 }
 0x140   : > { %775 = vmatmul.mubr.f32.vlgmr.msra.gmra.mxu1 %v652_v61 }
 0x1e2   : > { %v846_v52 = vpop.f32.mrf.mxu0 }
 0x1e4   : > { %v1037_v62 = vpop.f32.mrf.mxu0 }
 0x200   : > { %v983_v63 = vpop.f32.mrf.mxu1 }
 0x202   : > { %v984_v1 = vpop.f32.mrf.mxu1 }
 0x203   : > { %v985_v56 = vadd.f32 %v984_v1, %v983_v63 }
 0x205   : > { %v777_v45 = vadd.f32 %v985_v56, %v912_v0 }
 0x207   : > { %v847_v47 = vadd.f32 %v846_v52, %v777_v45 }
 0x209   : > { %850 = vst [vmem:[%s276_s13] sm:$0xff] %v847_v47 }
 0x20a PF: > { %s17_s24 = sadd.s32 1, %s1060_s24  }
 0x20b   : > { %p14_p4 = scmp.ge.s32.totalorder %s17_s24, 4  }
 0x20d   :  { %16 = sbr.rel (!%p14_p4) target bundleno = 1 (0x1), region = 78 }

</bundles_post_ra>
